<compile_context>
chip_gen: v7x
topology: tpu7x:2x2x1
jax: 0.10.0
libtpu: 0.0.40
codegen_flags: <defaults>
</compile_context>

<pallas_src>
import functools

import jax
import jax.numpy as jnp
from jax import lax
from jax.experimental import pallas as pl
from jax.experimental.pallas import tpu as pltpu

LANE = 128       # vreg lane width (last dim)
SUBLANE = 8      # f32 sublane count (second-to-last dim)
ROW_CHUNK = 128  # in-kernel row chunk (keeps f32 intermediates in the vreg file)


def _round_up(x, m):
    return (x + m - 1) // m * m


def qnetwork_kernel(x_ref, w1_ref, b1_ref, w2_ref, b2_ref, w3_ref, b3_ref, out_ref,
                    *, row_chunk):
    """Fused forward: relu(x@W1+b1) -> relu(.@W2+b2) -> .@W3+b3.

    Processes the (tb, state) tile in row chunks so only small f32 intermediates
    are live at a time; matmul operands are bf16 (MXU), accumulation / bias /
    ReLU are f32 (VPU).
    """
    w1 = w1_ref[...]
    w2 = w2_ref[...]
    w3 = w3_ref[...]
    b1 = b1_ref[...]
    b2 = b2_ref[...]
    b3 = b3_ref[...]
    n_chunks = out_ref.shape[0] // row_chunk  # static; tb is a multiple of row_chunk

    def body(c, carry):
        r = c * row_chunk
        x = x_ref[pl.ds(r, row_chunk), :].astype(jnp.bfloat16)          # (rc, S) bf16
        h1 = jnp.dot(x, w1, preferred_element_type=jnp.float32) + b1     # (rc, 128) f32
        h1 = jnp.maximum(h1, 0.0).astype(jnp.bfloat16)
        h2 = jnp.dot(h1, w2, preferred_element_type=jnp.float32) + b2    # (rc, 128) f32
        h2 = jnp.maximum(h2, 0.0).astype(jnp.bfloat16)
        out = jnp.dot(h2, w3, preferred_element_type=jnp.float32) + b3   # (rc, A) f32
        out_ref[pl.ds(r, row_chunk), :] = out.astype(out_ref.dtype)
        return carry

    lax.fori_loop(0, n_chunks, body, 0, unroll=True)


def init_params(key, state_size, fc1_units, fc2_units, action_size):
    """PyTorch-default-style uniform fan-in init, f32, layout (in, out)."""
    ks = jax.random.split(key, 6)

    def lin(kw, kb, fan_in, fan_out):
        bound = 1.0 / float(fan_in) ** 0.5
        w = jax.random.uniform(kw, (fan_in, fan_out), jnp.float32, -bound, bound)
        b = jax.random.uniform(kb, (fan_out,), jnp.float32, -bound, bound)
        return w, b

    w1, b1 = lin(ks[0], ks[1], state_size, fc1_units)
    w2, b2 = lin(ks[2], ks[3], fc1_units, fc2_units)
    w3, b3 = lin(ks[4], ks[5], fc2_units, action_size)
    return (w1, b1, w2, b2, w3, b3)


def prepare_params(params):
    """One-time prep: pad ONLY the hidden dims to 128 lanes, cast weights to bf16
    (MXU operands), keep biases f32.  State dim and action dim stay un-padded so
    the x / output HBM streams are minimal."""
    w1, b1, w2, b2, w3, b3 = params

    def pad_w(w, pad_in, pad_out):
        i, o = w.shape
        ip = _round_up(i, LANE) if pad_in else i
        op = _round_up(o, LANE) if pad_out else o
        wp = jnp.zeros((ip, op), jnp.float32).at[:i, :o].set(w)
        return wp.astype(jnp.bfloat16)

    def pad_b(b, pad_out):
        (o,) = b.shape
        op = _round_up(o, LANE) if pad_out else o
        return jnp.zeros((1, op), jnp.float32).at[0, :o].set(b)

    return (
        pad_w(w1, False, True), pad_b(b1, True),   # (S, 128),   (1, 128)
        pad_w(w2, True, True),  pad_b(b2, True),   # (128, 128), (1, 128)
        pad_w(w3, True, False), pad_b(b3, False),  # (128, A),   (1, A)
    )


@functools.partial(jax.jit, static_argnames=("block_batch",))
def qnetwork_forward(x, padded_params, *, block_batch=1024):
    """x: (batch, state_size) f32.  Returns (batch, action_size) f32 Q-values."""
    w1p, b1p, w2p, b2p, w3p, b3p = padded_params
    batch, state_size = x.shape
    h1p = w1p.shape[1]
    h2p = w2p.shape[1]
    action_size = w3p.shape[1]
    assert w1p.shape[0] == state_size and w3p.shape[0] == h2p

    # Batch tile: a multiple of the in-kernel row chunk; ragged last tile is
    # handled by Pallas (OOB input rows are garbage, OOB output rows masked).
    batch_r8 = _round_up(batch, SUBLANE)
    if batch_r8 <= ROW_CHUNK:
        tb = batch_r8
        rc = tb
    else:
        tb = min(_round_up(block_batch, ROW_CHUNK), _round_up(batch_r8, ROW_CHUNK))
        rc = ROW_CHUNK
    n_tiles = pl.cdiv(batch, tb)

    flops = 2 * n_tiles * tb * (state_size * h1p + h1p * h2p + h2p * action_size)
    bytes_accessed = (
        x.size * x.dtype.itemsize
        + batch * action_size * 4
        + sum(int(p.size) * p.dtype.itemsize for p in padded_params)
    )

    kernel = functools.partial(qnetwork_kernel, row_chunk=rc)

    return pl.pallas_call(
        kernel,
        out_shape=jax.ShapeDtypeStruct((batch, action_size), jnp.float32),
        grid=(n_tiles,),
        in_specs=[
            # x tile moves with the batch grid; last dim = full array dim (legal).
            pl.BlockSpec((tb, state_size), lambda i: (i, 0)),
            # Parameters: constant block index -> fetched once, resident in VMEM.
            pl.BlockSpec((state_size, h1p), lambda i: (0, 0)),
            pl.BlockSpec((1, h1p), lambda i: (0, 0)),
            pl.BlockSpec((h1p, h2p), lambda i: (0, 0)),
            pl.BlockSpec((1, h2p), lambda i: (0, 0)),
            pl.BlockSpec((h2p, action_size), lambda i: (0, 0)),
            pl.BlockSpec((1, action_size), lambda i: (0, 0)),
        ],
        out_specs=pl.BlockSpec((tb, action_size), lambda i: (i, 0)),
        compiler_params=pltpu.CompilerParams(
            dimension_semantics=("parallel",),  # batch tiles shard across v7x's 2 TCs
        ),
        cost_estimate=pl.CostEstimate(
            flops=flops, transcendentals=0, bytes_accessed=bytes_accessed
        ),
    )(x, w1p, b1p, w2p, b2p, w3p, b3p)


def _reference(x, params):
    w1, b1, w2, b2, w3, b3 = params
    h = jnp.maximum(x @ w1 + b1, 0.0)
    h = jnp.maximum(h @ w2 + b2, 0.0)
    return h @ w3 + b3


if __name__ == "__main__":
    # Shapes implied by the module: state_size=8, fc1=fc2=64, action_size=4.
    state_size, fc1_units, fc2_units, action_size = 8, 64, 64, 4

    key = jax.random.PRNGKey(0)
    k_x, k_xl, k_p = jax.random.split(key, 3)
    params = init_params(k_p, state_size, fc1_units, fc2_units, action_size)
    padded_params = prepare_params(params)  # pad + bf16-cast once, not per call

    # Small demo batch (single tile, single row chunk).
    x_small = jax.random.normal(k_x, (2, state_size), dtype=jnp.float32)
    out_small = jax.block_until_ready(qnetwork_forward(x_small, padded_params))
    assert out_small.shape == (2, action_size)
    # bf16 matmul operands with f32 accumulation -> loose tolerance vs f32 reference.
    assert jnp.allclose(out_small, _reference(x_small, params), atol=5e-2, rtol=5e-2)

    # Multi-tile + ragged-tail path: batch=300 with 128-row tiles -> grid=(3,).
    x_large = jax.random.normal(k_xl, (300, state_size), dtype=jnp.float32)
    out_large = jax.block_until_ready(
        qnetwork_forward(x_large, padded_params, block_batch=128)
    )
    assert out_large.shape == (300, action_size)
    assert jnp.allclose(out_large, _reference(x_large, params), atol=5e-2, rtol=5e-2)

    # Default large-tile config: single 384-row tile with 3 in-kernel row chunks.
    out_large2 = jax.block_until_ready(qnetwork_forward(x_large, padded_params))
    assert jnp.allclose(out_large2, _reference(x_large, params), atol=5e-2, rtol=5e-2)

    print("KERNEL_OK")
</pallas_src>

<mosaic_0001>
module attributes {stable_mosaic.version = 11 : i64} {
  func.func @qnetwork_kernel(%arg0: i32, %arg1: memref<8x8xf32, #tpu.memory_space<vmem>>, %arg2: memref<8x128xbf16, #tpu.memory_space<vmem>>, %arg3: memref<1x128xf32, #tpu.memory_space<vmem>>, %arg4: memref<128x128xbf16, #tpu.memory_space<vmem>>, %arg5: memref<1x128xf32, #tpu.memory_space<vmem>>, %arg6: memref<128x4xbf16, #tpu.memory_space<vmem>>, %arg7: memref<1x4xf32, #tpu.memory_space<vmem>>, %arg8: memref<8x4xf32, #tpu.memory_space<vmem>>) attributes {dimension_semantics = [#tpu.dimension_semantics<parallel>], iteration_bounds = array<i64: 1>, scalar_prefetch = 0 : i64, scratch_operands = 0 : i64, tpu.core_type = #tpu.core_type<tc>, window_params = [{transform_indices = @transform_0, window_bounds = array<i64: 8, 8>}, {pipeline_mode = #tpu.pipeline_mode<synchronous>, transform_indices = @transform_1, window_bounds = array<i64: 8, 128>}, {pipeline_mode = #tpu.pipeline_mode<synchronous>, transform_indices = @transform_2, window_bounds = array<i64: 1, 128>}, {pipeline_mode = #tpu.pipeline_mode<synchronous>, transform_indices = @transform_3, window_bounds = array<i64: 128, 128>}, {pipeline_mode = #tpu.pipeline_mode<synchronous>, transform_indices = @transform_4, window_bounds = array<i64: 1, 128>}, {pipeline_mode = #tpu.pipeline_mode<synchronous>, transform_indices = @transform_5, window_bounds = array<i64: 128, 4>}, {pipeline_mode = #tpu.pipeline_mode<synchronous>, transform_indices = @transform_6, window_bounds = array<i64: 1, 4>}, {transform_indices = @transform_7, window_bounds = array<i64: 8, 4>}]} {
    %c0 = arith.constant 0 : index
    %c0_0 = arith.constant 0 : index
    %0 = vector.load %arg2[%c0, %c0_0] : memref<8x128xbf16, #tpu.memory_space<vmem>>, vector<8x128xbf16>
    %c0_1 = arith.constant 0 : index
    %c0_2 = arith.constant 0 : index
    %1 = vector.load %arg4[%c0_1, %c0_2] : memref<128x128xbf16, #tpu.memory_space<vmem>>, vector<128x128xbf16>
    %c0_3 = arith.constant 0 : index
    %c0_4 = arith.constant 0 : index
    %2 = vector.load %arg6[%c0_3, %c0_4] : memref<128x4xbf16, #tpu.memory_space<vmem>>, vector<128x4xbf16>
    %c0_5 = arith.constant 0 : index
    %c0_6 = arith.constant 0 : index
    %3 = vector.load %arg3[%c0_5, %c0_6] : memref<1x128xf32, #tpu.memory_space<vmem>>, vector<1x128xf32>
    %c0_7 = arith.constant 0 : index
    %c0_8 = arith.constant 0 : index
    %4 = vector.load %arg5[%c0_7, %c0_8] : memref<1x128xf32, #tpu.memory_space<vmem>>, vector<1x128xf32>
    %c0_9 = arith.constant 0 : index
    %c0_10 = arith.constant 0 : index
    %5 = vector.load %arg7[%c0_9, %c0_10] : memref<1x4xf32, #tpu.memory_space<vmem>>, vector<1x4xf32>
    %c0_i32 = arith.constant 0 : i32
    %c8_i32 = arith.constant 8 : i32
    %6 = arith.muli %c0_i32, %c8_i32 : i32
    %7 = arith.index_cast %6 : i32 to index
    %c0_11 = arith.constant 0 : index
    %8 = vector.load %arg1[%7, %c0_11] : memref<8x8xf32, #tpu.memory_space<vmem>>, vector<8x8xf32>
    %9 = arith.truncf %8 : vector<8x8xf32> to vector<8x8xbf16>
    %cst = arith.constant dense<0.000000e+00> : vector<8x128xf32>
    %10 = tpu.matmul %9, %0, %cst {dimension_numbers = #tpu.dot_dimension_numbers<[1], [0], [0], [1], [0, 0, 1, 1], [], []>} : vector<8x8xbf16>, vector<8x128xbf16>, vector<8x128xf32> -> vector<8x128xf32>
    %11 = vector.broadcast %3 : vector<1x128xf32> to vector<8x128xf32>
    %12 = arith.addf %10, %11 : vector<8x128xf32>
    %cst_12 = arith.constant 0.000000e+00 : f32
    %13 = vector.broadcast %cst_12 : f32 to vector<8x128xf32>
    %14 = arith.maximumf %12, %13 : vector<8x128xf32>
    %15 = arith.truncf %14 : vector<8x128xf32> to vector<8x128xbf16>
    %cst_13 = arith.constant dense<0.000000e+00> : vector<8x128xf32>
    %16 = tpu.matmul %15, %1, %cst_13 {dimension_numbers = #tpu.dot_dimension_numbers<[1], [0], [0], [1], [0, 0, 1, 1], [], []>} : vector<8x128xbf16>, vector<128x128xbf16>, vector<8x128xf32> -> vector<8x128xf32>
    %17 = vector.broadcast %4 : vector<1x128xf32> to vector<8x128xf32>
    %18 = arith.addf %16, %17 : vector<8x128xf32>
    %cst_14 = arith.constant 0.000000e+00 : f32
    %19 = vector.broadcast %cst_14 : f32 to vector<8x128xf32>
    %20 = arith.maximumf %18, %19 : vector<8x128xf32>
    %21 = arith.truncf %20 : vector<8x128xf32> to vector<8x128xbf16>
    %cst_15 = arith.constant dense<0.000000e+00> : vector<8x4xf32>
    %22 = tpu.matmul %21, %2, %cst_15 {dimension_numbers = #tpu.dot_dimension_numbers<[1], [0], [0], [1], [0, 0, 1, 1], [], []>} : vector<8x128xbf16>, vector<128x4xbf16>, vector<8x4xf32> -> vector<8x4xf32>
    %23 = vector.broadcast %5 : vector<1x4xf32> to vector<8x4xf32>
    %24 = arith.addf %22, %23 : vector<8x4xf32>
    %25 = arith.index_cast %6 : i32 to index
    %c0_16 = arith.constant 0 : index
    %26 = vector.load %arg8[%25, %c0_16] : memref<8x4xf32, #tpu.memory_space<vmem>>, vector<8x4xf32>
    tpu.vector_store %arg8[%25, %c0_16], %24 {strides = array<i32>} : memref<8x4xf32, #tpu.memory_space<vmem>>, vector<8x4xf32>,
    %c1_i32 = arith.constant 1 : i32
    return
  }
  func.func @transform_0(%arg0: i32) -> (i32, i32) {
    %c0_i32 = arith.constant 0 : i32
    %c0_i32_0 = arith.constant 0 : i32
    return %arg0, %c0_i32 : i32, i32
  }
  func.func @transform_1(%arg0: i32) -> (i32, i32) {
    %c0_i32 = arith.constant 0 : i32
    %c0_i32_0 = arith.constant 0 : i32
    %c0_i32_1 = arith.constant 0 : i32
    return %c0_i32, %c0_i32_0 : i32, i32
  }
  func.func @transform_2(%arg0: i32) -> (i32, i32) {
    %c0_i32 = arith.constant 0 : i32
    %c0_i32_0 = arith.constant 0 : i32
    %c0_i32_1 = arith.constant 0 : i32
    return %c0_i32, %c0_i32_0 : i32, i32
  }
  func.func @transform_3(%arg0: i32) -> (i32, i32) {
    %c0_i32 = arith.constant 0 : i32
    %c0_i32_0 = arith.constant 0 : i32
    %c0_i32_1 = arith.constant 0 : i32
    return %c0_i32, %c0_i32_0 : i32, i32
  }
  func.func @transform_4(%arg0: i32) -> (i32, i32) {
    %c0_i32 = arith.constant 0 : i32
    %c0_i32_0 = arith.constant 0 : i32
    %c0_i32_1 = arith.constant 0 : i32
    return %c0_i32, %c0_i32_0 : i32, i32
  }
  func.func @transform_5(%arg0: i32) -> (i32, i32) {
    %c0_i32 = arith.constant 0 : i32
    %c0_i32_0 = arith.constant 0 : i32
    %c0_i32_1 = arith.constant 0 : i32
    return %c0_i32, %c0_i32_0 : i32, i32
  }
  func.func @transform_6(%arg0: i32) -> (i32, i32) {
    %c0_i32 = arith.constant 0 : i32
    %c0_i32_0 = arith.constant 0 : i32
    %c0_i32_1 = arith.constant 0 : i32
    return %c0_i32, %c0_i32_0 : i32, i32
  }
  func.func @transform_7(%arg0: i32) -> (i32, i32) {
    %c0_i32 = arith.constant 0 : i32
    %c0_i32_0 = arith.constant 0 : i32
    return %arg0, %c0_i32 : i32, i32
  }
}

</mosaic_0001>

<bundles_post_ra>
// kernel: qnetwork_forward.1
= control target key start
LH: loop header
LB: loop body
LE: loop exit
PB: predicated region body
PF: predicated region fallthrough
CT: control target
= control target key end

     0   :  { %12 = vsyncpa [#allocation3], 0  ;;  %vm76_vm0 = vcmask 1043456   ;;  %v461_v1 = vmov 0.0   ;;  %vm462_vm1 = vmmov 0   ;;  %vm72_vm2 = vcmask 64512   ;;  %s601_s0 = inlined_call_operand.vmem [shape: f32[2,8], index: 0, kind: input, shape index: {}]   ;;  %s602_s1 = inlined_call_operand.vmem [shape: bf16[8,128], index: 1, kind: input, shape index: {}]   ;;  %s603_s2 = inlined_call_operand.vmem [shape: f32[1,128], index: 2, kind: input, shape index: {}]   ;;  %s604_s3 = inlined_call_operand.vmem [shape: bf16[128,128], index: 3, kind: input, shape index: {}]   ;;  %s605_s4 = inlined_call_operand.vmem [shape: f32[1,128], index: 4, kind: input, shape index: {}]   ;;  %s606_s5 = inlined_call_operand.vmem [shape: bf16[128,4], index: 5, kind: input, shape index: {}]   ;;  %s607_s6 = inlined_call_operand.vmem [shape: f32[1,4], index: 6, kind: input, shape index: {}]   ;;  %s608_s7 = inlined_call_operand.hbm [shape: f32[2,4], index: 7, kind: output, shape index: {}]  }
   0x1   :  { %v28_v0 = vld [vmem:[%s602_s1] sm:$0xf]  ;;  %370 = vmatprep.subr.bf16.mxu0 %v461_v1  ;;  %376 = vmatprep.subr.bf16.mxu1 %v461_v1  ;;  %v422_v6 = vld [vmem:[%s604_s3 + $0x8] sm:$0xff]   ;;  %v423_v7 = vld [vmem:[%s604_s3 + $0x10] sm:$0xff]   ;;  %vm312_vm3 = vcmask 31744  }
   0x2   :  { %v78_v2 = vsel %vm76_vm0, %v28_v0, 0  ;;  %v64_v3 = vld [vmem:[%s601_s0] sm:$0xff]  ;;  %372 = vmatprep.mubr.msk.bf16.mxu0 %vm462_vm1, %v461_v1  ;;  %392 = vmatprep.mubr.msk.bf16.mxu1 %vm462_vm1, %v461_v1  ;;  %v424_v8 = vld [vmem:[%s604_s3 + $0x18] sm:$0xff]   ;;  %v426_v10 = vld [vmem:[%s604_s3 + $0x28] sm:$0xff]  }
   0x3   :  { %371 = vmatpush3.bf16.msra.mxu0 %v78_v2  ;;  %v65_v4 = vpack.c.bf16 %v64_v3, %v64_v3  ;;  %v421_v5 = vld [vmem:[%s604_s3] sm:$0xff]   ;;  %v427_v11 = vld [vmem:[%s604_s3 + $0x30] sm:$0xff]   ;;  %v428_v12 = vld [vmem:[%s604_s3 + $0x38] sm:$0xff]  }
   0x4   :  { %396 = vmatprep.subr.bf16.mxu0 %v461_v1  ;;  %377 = vmatpush3.bf16.msra.mxu1 %v421_v5  ;;  %v425_v9 = vld [vmem:[%s604_s3 + $0x20] sm:$0xff]   ;;  %v430_v14 = vld [vmem:[%s606_s5 + $0x8] sm:$0xff]   ;;  %v431_v15 = vld [vmem:[%s606_s5 + $0x10] sm:$0xff]  }
   0x5   :  { %378 = vmatprep.subr.bf16.mxu1 %v461_v1  ;;  %v429_v13 = vld [vmem:[%s606_s5] sm:$0xff]   ;;  %v432_v16 = vld [vmem:[%s606_s5 + $0x18] sm:$0xff]   ;;  %v434_v18 = vld [vmem:[%s606_s5 + $0x28] sm:$0xff]  }
   0x6   :  { %373 = vmatmul.mubr.msk.bf16.vlgmr.msra.gmra.mrb[0].mxu0 %vm72_vm2, %v65_v4  ;;  %v433_v17 = vld [vmem:[%s606_s5 + $0x20] sm:$0xff]   ;;  %v435_v27 = vld [vmem:[%s606_s5 + $0x30] sm:$0xff]   ;;  %v436_v28 = vld [vmem:[%s606_s5 + $0x38] sm:$0xff]  }
   0x7   :  { %412 = vmatprep.mubr.msk.bf16.mxu0 %vm462_vm1, %v461_v1  ;;  %397 = vmatpush3.bf16.msra.mxu0 %v429_v13  ;;  %v330_v19 = vld [vmem:[%s603_s2] ss:$0 sm:$0xff] }
   0x8   :  { %379 = vmatpush3.bf16.msra.mxu1 %v422_v6  ;;  %398 = vmatprep.subr.bf16.mxu0 %v461_v1  ;;  %v332_v29 = vld [vmem:[%s605_s4] ss:$0 sm:$0xff] }
   0x9   :  { %380 = vmatprep.subr.bf16.mxu1 %v461_v1  ;;  %v341_v37 = vld [vmem:[%s607_s6] ss:$0 sm:$0xff] }
   0xb   :  { %399 = vmatpush3.bf16.msra.mxu0 %v430_v14 }
   0xc   :  { %381 = vmatpush3.bf16.msra.mxu1 %v423_v7  ;;  %400 = vmatprep.subr.bf16.mxu0 %v461_v1 }
   0xd   :  { %382 = vmatprep.subr.bf16.mxu1 %v461_v1 }
   0xf   :  { %401 = vmatpush3.bf16.msra.mxu0 %v431_v15 }
  0x10   :  { %383 = vmatpush3.bf16.msra.mxu1 %v424_v8  ;;  %402 = vmatprep.subr.bf16.mxu0 %v461_v1 }
  0x11   :  { %384 = vmatprep.subr.bf16.mxu1 %v461_v1 }
  0x13   :  { %403 = vmatpush3.bf16.msra.mxu0 %v432_v16 }
  0x14   :  { %385 = vmatpush3.bf16.msra.mxu1 %v425_v9  ;;  %404 = vmatprep.subr.bf16.mxu0 %v461_v1 }
  0x15   :  { %386 = vmatprep.subr.bf16.mxu1 %v461_v1 }
  0x17   :  { %405 = vmatpush3.bf16.msra.mxu0 %v433_v17 }
  0x18   :  { %387 = vmatpush3.bf16.msra.mxu1 %v426_v10  ;;  %406 = vmatprep.subr.bf16.mxu0 %v461_v1 }
  0x19   :  { %388 = vmatprep.subr.bf16.mxu1 %v461_v1 }
  0x1b   :  { %407 = vmatpush3.bf16.msra.mxu0 %v434_v18 }
  0x1c   :  { %389 = vmatpush3.bf16.msra.mxu1 %v427_v11  ;;  %408 = vmatprep.subr.bf16.mxu0 %v461_v1 }
  0x1d   :  { %390 = vmatprep.subr.bf16.mxu1 %v461_v1 }
  0x1f   :  { %409 = vmatpush3.bf16.msra.mxu0 %v435_v27 }
  0x20   :  { %391 = vmatpush3.bf16.msra.mxu1 %v428_v12  ;;  %410 = vmatprep.subr.bf16.mxu0 %v461_v1 }
  0x23   :  { %411 = vmatpush3.bf16.msra.mxu0 %v436_v28 }
  0xd9   :  { %v114_v20 = vpop.f32.mrb[0].mxu0 }
  0xda   :  { %v115_v21 = vadd.f32 %v330_v19, %v114_v20  ;;  %v374_v22 = vpop.f32.mrb[1].mxu0 }
  0xdb   :  { %v117_v23 = vpop.f32.mrb[2].mxu0 }
  0xdc   :  { %v120_v24 = vmax.f32 %v115_v21, 0.0  ;;  %v375_v25 = vpop.f32.mrb[3].mxu0 }
  0xde   :  { %v121_v26 = vpack.c.bf16 %v120_v24, %v120_v24 }
  0xe0   :  { %393 = vmatmul.mubr.bf16.vlgmr.msra.gmra.mrb[0].mxu1 %v121_v26 }
 0x1b3   :  { %v210_v30 = vpop.f32.mrb[0].mxu1 }
 0x1b4   :  { %v211_v31 = vadd.f32 %v332_v29, %v210_v30  ;;  %v394_v32 = vpop.f32.mrb[1].mxu1 }
 0x1b5   :  { %v213_v33 = vpop.f32.mrb[2].mxu1 }
 0x1b6   :  { %v216_v34 = vmax.f32 %v211_v31, 0.0  ;;  %v395_v35 = vpop.f32.mrb[3].mxu1 }
 0x1b8   :  { %v217_v36 = vpack.c.bf16 %v216_v34, %v216_v34 }
 0x1ba   :  { %413 = vmatmul.mubr.bf16.vlgmr.msra.gmra.mrb[4].mxu0 %v217_v36 }
 0x28d   :  { %v306_v38 = vpop.f32.mrb[4].mxu0 }
 0x28e   :  { %v307_v39 = vadd.f32 %v341_v37, %v306_v38  ;;  %v414_v40 = vpop.f32.mrb[5].mxu0 }
 0x28f   :  { %v309_v41 = vpop.f32.mrb[6].mxu0 }
 0x290   :  { %313 = vst.msk [vmem:[#allocation2] sm:$0xff] %vm312_vm3, %v307_v39  ;;  %v415_v42 = vpop.f32.mrb[7].mxu0 }
 0x291   :  { %318 = vsyncadd [#allocation3], 96  ;;  %s463_s4 = smov [#allocation2]  }
 0x292   :  { %s319_s5 = sshll.u32 %s463_s4, 4  ;;  %s320_s5 = int_to_ptr.vmem [resolvable:$true] %s319_s5 }
 0x293   :  { %s437_s14 = scalar_lea.vmem %s320_s5, 32  ;;  %s441_s15 = scalar_lea.vmem %s320_s5, 128 }
 0x294   :  { %p438_p0 = scmp.ne.s32.totalorder %s320_s5, %s437_s14  ;;  %p442_p1 = scmp.lt.s32.totalorder %s320_s5, %s320_s5 }
 0x295   :  { %p443_p2 = scmp.lt.s32.totalorder %s441_s15, %s437_s14 }
 0x297   :  { %p444_p3 = por %p443_p2, %p442_p1 }
 0x299   :  { %p445_p4 = pnand %p444_p3, %p438_p0 }
 0x29b   :  { %448 = shalt.err (!%p445_p4)
}
 0x29c   :  { %s449_s17 = scalar_lea.hbm %s608_s7, 32 }
 0x29d   :  { %p450_p5 = scmp.ne.s32.totalorder %s608_s7, %s449_s17  ;;  %p453_p6 = scmp.lt.u32.totalorder %s449_s17, %s608_s7 }
 0x29f   :  { %p455_p7 = pnand %p453_p6, %p450_p5 }
 0x2a1   :  { %458 = shalt.err (!%p455_p7)
}
 0x2a2   :  { %s464_s22 = smov 32   ;;  %s465_s23 = smov 2  }
 0x2a3   :  { %325 = dma.vmem_to_hbm [thread:$0]  %s320_s5, 32, %s608_s7, [#allocation3], %s464_s22, %s464_s22, %s465_s23  }
 0x2a4   :  { %459 = dma.done.wait [#allocation3], 128  }
 0x2a5   :  { %460 = vsyncadd [#allocation3], 4294967168 }
 0x2a6   :  { %329 = vsyncpa [#allocation3], 1 }

</bundles_post_ra>
